<compile_context>
chip_gen: v7x
topology: tpu7x:2x2x1
jax: 0.10.0
libtpu: 0.0.40
codegen_flags: <defaults>
</compile_context>

<pallas_src>
import jax
import jax.numpy as jnp
from jax import lax
from jax.experimental import pallas as pl
from jax.experimental.pallas import tpu as pltpu


def _make_kernel(hw: int, thw: int, need_mask: bool):
    """Builds the kernel for a (tb, thw) input block and (tb, 128) output block."""

    def kernel(img_ref, ind_ref, vmin_ref, vmax_ref):
        k = pl.program_id(1)
        nk = pl.num_programs(1)

        x = img_ref[...]                                     # (tb, thw), native dtype

        if need_mask:
            # Last H*W block may be partial: mask lanes beyond the true width
            # so garbage never reaches the min/max.
            col = k * thw + lax.broadcasted_iota(jnp.int32, x.shape, 1)
            valid = col < hw
            pos_inf = jnp.array(jnp.inf, dtype=x.dtype)
            neg_inf = jnp.array(-jnp.inf, dtype=x.dtype)
            x_for_min = jnp.where(valid, x, pos_inf)
            x_for_max = jnp.where(valid, x, neg_inf)
        else:
            x_for_min = x
            x_for_max = x

        # Per-image (sublane-row) block reductions in native dtype; cast only
        # the per-image scalars to f32.
        bmin = jnp.min(x_for_min, axis=-1, keepdims=True).astype(jnp.float32)
        bmax = jnp.max(x_for_max, axis=-1, keepdims=True).astype(jnp.float32)

        @pl.when(k == 0)
        def _():
            vmin_ref[...] = jnp.full_like(vmin_ref, jnp.inf)
            vmax_ref[...] = jnp.full_like(vmax_ref, -jnp.inf)

        vmin_ref[...] = jnp.minimum(vmin_ref[...], bmin)
        vmax_ref[...] = jnp.maximum(vmax_ref[...], bmax)

        @pl.when(k == nk - 1)
        def _():
            # uint8 quantization applied to the two scalars only; floor/*255/clip
            # is monotone so max(quant(x)) == quant(max(x)).  (PyTorch's uint8
            # cast wraps mod 256 for inputs outside [0, 1]; we clip instead.)
            qmax = jnp.clip(jnp.floor(vmax_ref[...] * 255.0), 0.0, 255.0)
            qmin = jnp.clip(jnp.floor(vmin_ref[...] * 255.0), 0.0, 255.0)
            # TODO(synk): pyzbar barcode decode has no Pallas equivalent;
            # deterministic contrast proxy: "recognized" iff quantized dynamic
            # range >= 128 levels.
            not_recognized = ((qmax - qmin) < 128.0).astype(jnp.float32)   # (tb, 1)
            ind_ref[...] = jnp.broadcast_to(not_recognized, ind_ref.shape)  # (tb, 128)

    return kernel


def recognizability_loss(sr_imgs: jax.Array) -> jax.Array:
    """sr_imgs: (B, 1, H, W) grayscale images in [0, 1] (float dtype).

    Returns a scalar f32: fraction of the batch that is "not recognized".
    """
    assert sr_imgs.ndim == 4 and sr_imgs.shape[1] == 1, "expect NCHW grayscale"
    b = sr_imgs.shape[0]

    imgs = sr_imgs.reshape(b, -1)                    # (B, H*W), native dtype, free reshape
    hw = imgs.shape[1]
    itemsize = jnp.dtype(imgs.dtype).itemsize

    def round_up(v, m):
        return ((v + m - 1) // m) * m

    # Dtype-aware minimum sublane tile: 8 for f32, 16 for bf16, 32 for int8/fp8.
    sub = max(8, 32 // itemsize)
    target_bytes = 4 * 1024 * 1024                   # ~4 MiB input blocks
    row_bytes = hw * itemsize

    if sub * row_bytes <= target_bytes:
        # Small/medium images: full-width rows, many images per block.
        thw = hw
        tb = max(sub, min(1024, ((target_bytes // row_bytes) // sub) * sub))
        tb = min(tb, round_up(b, sub))
    else:
        # Large images: tile the H*W axis, minimum sublane count of images.
        thw = max(128, ((target_bytes // (sub * itemsize)) // 128) * 128)
        tb = sub

    batch_grid = pl.cdiv(b, tb)
    # v7x has 2 TensorCores: make sure the "parallel" axis has >= 2 blocks
    # whenever the batch allows it.
    if batch_grid < 2 and b > sub:
        tb = max(sub, round_up(pl.cdiv(b, 2), sub))
        batch_grid = pl.cdiv(b, tb)
    hw_grid = pl.cdiv(hw, thw)

    need_mask = (hw % thw) != 0

    # Triple-buffer tiny input blocks on long grids (hides exposed per-step
    # DMA startup, mainly a v7x win); default double-buffering otherwise.
    block_in_bytes = tb * thw * itemsize
    total_steps = batch_grid * hw_grid
    if block_in_bytes < (1 << 20) and total_steps >= 4:
        in_spec = pl.BlockSpec((tb, thw), lambda i, k: (i, k),
                               pipeline_mode=pl.Buffered(3))
    else:
        in_spec = pl.BlockSpec((tb, thw), lambda i, k: (i, k))

    ind = pl.pallas_call(
        _make_kernel(hw, thw, need_mask),
        out_shape=jax.ShapeDtypeStruct((b, 128), jnp.float32),
        grid_spec=pltpu.PrefetchScalarGridSpec(
            num_scalar_prefetch=0,
            grid=(batch_grid, hw_grid),
            in_specs=[in_spec],
            # Output block resident across the H*W (reduction) axis; written
            # once on the last k with an unmasked lane-dense (tb, 128) store.
            out_specs=pl.BlockSpec((tb, 128), lambda i, k: (i, 0)),
            scratch_shapes=[
                pltpu.VMEM((tb, 1), jnp.float32),    # running min
                pltpu.VMEM((tb, 1), jnp.float32),    # running max
            ],
        ),
        compiler_params=pltpu.CompilerParams(
            dimension_semantics=("parallel", "arbitrary"),
            vmem_limit_bytes=32 * 1024 * 1024,
        ),
    )(imgs)

    # Tiny finalize in JAX: sum per-image indicators (lane 0) and normalize.
    return jnp.sum(ind[:, 0]) / jnp.float32(b)


if __name__ == "__main__":
    key = jax.random.PRNGKey(0)
    B, C, H, W = 2, 1, 16, 128
    sr_imgs = jax.random.uniform(key, (B, C, H, W), dtype=jnp.float32)

    loss = recognizability_loss(sr_imgs)
    jax.block_until_ready(loss)

    # sanity: loss must be a fraction of the batch, in [0, 1]
    lv = float(loss)
    assert 0.0 <= lv <= 1.0, f"loss out of range: {lv}"
    print("KERNEL_OK")
</pallas_src>

<mosaic_0001>
module attributes {stable_mosaic.version = 11 : i64} {
  func.func @kernel(%arg0: i32, %arg1: i32, %arg2: memref<8x2048xf32, #tpu.memory_space<vmem>>, %arg3: memref<8x128xf32, #tpu.memory_space<vmem>>, %arg4: memref<8x1xf32, #tpu.memory_space<vmem>>, %arg5: memref<8x1xf32, #tpu.memory_space<vmem>>) attributes {dimension_semantics = [#tpu.dimension_semantics<parallel>, #tpu.dimension_semantics<arbitrary>], iteration_bounds = array<i64: 1, 1>, scalar_prefetch = 0 : i64, scratch_operands = 2 : i64, tpu.core_type = #tpu.core_type<tc>, window_params = [{transform_indices = @transform_0, window_bounds = array<i64: 8, 2048>}, {transform_indices = @transform_1, window_bounds = array<i64: 8, 128>}]} {
    %c0 = arith.constant 0 : index
    %c0_0 = arith.constant 0 : index
    %0 = vector.load %arg2[%c0, %c0_0] : memref<8x2048xf32, #tpu.memory_space<vmem>>, vector<8x2048xf32>
    %cst = arith.constant dense<0x7F800000> : vector<8xf32>
    %1 = vector.multi_reduction <minimumf>, %0, %cst [1] : vector<8x2048xf32> to vector<8xf32>
    %2 = vector.shape_cast %1 : vector<8xf32> to vector<8x1xf32>
    %cst_1 = arith.constant dense<0xFF800000> : vector<8xf32>
    %3 = vector.multi_reduction <maximumf>, %0, %cst_1 [1] : vector<8x2048xf32> to vector<8xf32>
    %4 = vector.shape_cast %3 : vector<8xf32> to vector<8x1xf32>
    %c0_i32 = arith.constant 0 : i32
    %5 = arith.cmpi eq, %arg1, %c0_i32 : i32
    %6 = arith.extui %5 : i1 to i32
    %c0_i32_2 = arith.constant 0 : i32
    %7 = arith.cmpi ne, %6, %c0_i32_2 : i32
    scf.if %7 {
      %cst_13 = arith.constant 0x7F800000 : f32
      %17 = vector.broadcast %cst_13 : f32 to vector<8x1xf32>
      %c0_14 = arith.constant 0 : index
      %c0_15 = arith.constant 0 : index
      %18 = vector.load %arg4[%c0_14, %c0_15] : memref<8x1xf32, #tpu.memory_space<vmem>>, vector<8x1xf32>
      tpu.vector_store %arg4[%c0_14, %c0_15], %17 {strides = array<i32>} : memref<8x1xf32, #tpu.memory_space<vmem>>, vector<8x1xf32>,
      %cst_16 = arith.constant 0xFF800000 : f32
      %19 = vector.broadcast %cst_16 : f32 to vector<8x1xf32>
      %c0_17 = arith.constant 0 : index
      %c0_18 = arith.constant 0 : index
      %20 = vector.load %arg5[%c0_17, %c0_18] : memref<8x1xf32, #tpu.memory_space<vmem>>, vector<8x1xf32>
      tpu.vector_store %arg5[%c0_17, %c0_18], %19 {strides = array<i32>} : memref<8x1xf32, #tpu.memory_space<vmem>>, vector<8x1xf32>,
    } else {
    }
    %c0_3 = arith.constant 0 : index
    %c0_4 = arith.constant 0 : index
    %8 = vector.load %arg4[%c0_3, %c0_4] : memref<8x1xf32, #tpu.memory_space<vmem>>, vector<8x1xf32>
    %9 = arith.minimumf %8, %2 : vector<8x1xf32>
    %c0_5 = arith.constant 0 : index
    %c0_6 = arith.constant 0 : index
    %10 = vector.load %arg4[%c0_5, %c0_6] : memref<8x1xf32, #tpu.memory_space<vmem>>, vector<8x1xf32>
    tpu.vector_store %arg4[%c0_5, %c0_6], %9 {strides = array<i32>} : memref<8x1xf32, #tpu.memory_space<vmem>>, vector<8x1xf32>,
    %c0_7 = arith.constant 0 : index
    %c0_8 = arith.constant 0 : index
    %11 = vector.load %arg5[%c0_7, %c0_8] : memref<8x1xf32, #tpu.memory_space<vmem>>, vector<8x1xf32>
    %12 = arith.maximumf %11, %4 : vector<8x1xf32>
    %c0_9 = arith.constant 0 : index
    %c0_10 = arith.constant 0 : index
    %13 = vector.load %arg5[%c0_9, %c0_10] : memref<8x1xf32, #tpu.memory_space<vmem>>, vector<8x1xf32>
    tpu.vector_store %arg5[%c0_9, %c0_10], %12 {strides = array<i32>} : memref<8x1xf32, #tpu.memory_space<vmem>>, vector<8x1xf32>,
    %c0_i32_11 = arith.constant 0 : i32
    %14 = arith.cmpi eq, %arg1, %c0_i32_11 : i32
    %15 = arith.extui %14 : i1 to i32
    %c0_i32_12 = arith.constant 0 : i32
    %16 = arith.cmpi ne, %15, %c0_i32_12 : i32
    scf.if %16 {
      %c0_13 = arith.constant 0 : index
      %c0_14 = arith.constant 0 : index
      %17 = vector.load %arg5[%c0_13, %c0_14] : memref<8x1xf32, #tpu.memory_space<vmem>>, vector<8x1xf32>
      %cst_15 = arith.constant 2.550000e+02 : f32
      %18 = vector.broadcast %cst_15 : f32 to vector<8x1xf32>
      %19 = arith.mulf %17, %18 : vector<8x1xf32>
      %20 = math.floor %19 : vector<8x1xf32>
      %cst_16 = arith.constant 0.000000e+00 : f32
      %cst_17 = arith.constant 2.550000e+02 : f32
      %21 = vector.broadcast %cst_16 : f32 to vector<8x1xf32>
      %22 = arith.maximumf %21, %20 : vector<8x1xf32>
      %23 = vector.broadcast %cst_17 : f32 to vector<8x1xf32>
      %24 = arith.minimumf %23, %22 : vector<8x1xf32>
      %c0_18 = arith.constant 0 : index
      %c0_19 = arith.constant 0 : index
      %25 = vector.load %arg4[%c0_18, %c0_19] : memref<8x1xf32, #tpu.memory_space<vmem>>, vector<8x1xf32>
      %cst_20 = arith.constant 2.550000e+02 : f32
      %26 = vector.broadcast %cst_20 : f32 to vector<8x1xf32>
      %27 = arith.mulf %25, %26 : vector<8x1xf32>
      %28 = math.floor %27 : vector<8x1xf32>
      %cst_21 = arith.constant 0.000000e+00 : f32
      %cst_22 = arith.constant 2.550000e+02 : f32
      %29 = vector.broadcast %cst_21 : f32 to vector<8x1xf32>
      %30 = arith.maximumf %29, %28 : vector<8x1xf32>
      %31 = vector.broadcast %cst_22 : f32 to vector<8x1xf32>
      %32 = arith.minimumf %31, %30 : vector<8x1xf32>
      %33 = arith.subf %24, %32 : vector<8x1xf32>
      %cst_23 = arith.constant 1.280000e+02 : f32
      %34 = vector.broadcast %cst_23 : f32 to vector<8x1xf32>
      %35 = arith.cmpf olt, %33, %34 : vector<8x1xf32>
      %36 = arith.extui %35 : vector<8x1xi1> to vector<8x1xi32>
      %37 = arith.sitofp %36 : vector<8x1xi32> to vector<8x1xf32>
      %38 = vector.shape_cast %37 : vector<8x1xf32> to vector<8x1xf32>
      %39 = vector.broadcast %38 : vector<8x1xf32> to vector<8x128xf32>
      %c0_24 = arith.constant 0 : index
      %c0_25 = arith.constant 0 : index
      %40 = vector.load %arg3[%c0_24, %c0_25] : memref<8x128xf32, #tpu.memory_space<vmem>>, vector<8x128xf32>
      tpu.vector_store %arg3[%c0_24, %c0_25], %39 {strides = array<i32>} : memref<8x128xf32, #tpu.memory_space<vmem>>, vector<8x128xf32>,
    } else {
    }
    return
  }
  func.func @transform_0(%arg0: i32, %arg1: i32) -> (i32, i32) {
    %c0_i32 = arith.constant 0 : i32
    return %arg0, %arg1 : i32, i32
  }
  func.func @transform_1(%arg0: i32, %arg1: i32) -> (i32, i32) {
    %c0_i32 = arith.constant 0 : i32
    %c0_i32_0 = arith.constant 0 : i32
    return %arg0, %c0_i32 : i32, i32
  }
}

</mosaic_0001>

<bundles_post_ra>
// kernel: tpu_custom_call.1
= control target key start
LH: loop header
LB: loop body
LE: loop exit
PB: predicated region body
PF: predicated region fallthrough
CT: control target
= control target key end

     0   :  { %6 = vsyncpa [#allocation5], 0  ;;  %s415_s0 = inlined_call_operand.hbm [shape: f32[2,2048], index: 0, kind: input, shape index: {}]   ;;  %s416_s1 = inlined_call_operand.hbm [shape: f32[2,128], index: 1, kind: output, shape index: {}]  }
   0x1   :  { %7 = vsyncpa [#allocation6], 0 }
   0x2   :  { %12 = vsyncadd [#allocation5], 1536  ;;  %s364_s6 = smov [#allocation4]   ;;  %s316_s10 = scalar_lea.hbm %s415_s0, 512 }
   0x3   :  { %s13_s7 = sshll.u32 %s364_s6, 4  ;;  %p317_p0 = scmp.ne.s32.totalorder %s415_s0, %s316_s10  ;;  %s14_s7 = int_to_ptr.vmem [resolvable:$true] %s13_s7 }
   0x4   :  { %p320_p1 = scmp.lt.u32.totalorder %s316_s10, %s415_s0 }
   0x6   :  { %p322_p2 = pnand %p320_p1, %p317_p0 }
   0x8   :  { %325 = shalt.err (!%p322_p2)
}
   0x9   :  { %s326_s15 = scalar_lea.vmem %s14_s7, 512  ;;  %s330_s16 = scalar_lea.vmem %s14_s7, 2048 }
   0xa   :  { %p327_p3 = scmp.ne.s32.totalorder %s14_s7, %s326_s15  ;;  %p331_p4 = scmp.lt.s32.totalorder %s14_s7, %s14_s7 }
   0xb   :  { %p332_p5 = scmp.lt.s32.totalorder %s330_s16, %s326_s15 }
   0xd   :  { %p333_p6 = por %p332_p5, %p331_p4 }
   0xf   :  { %p334_p7 = pnand %p333_p6, %p327_p3 }
  0x11   :  { %337 = shalt.err (!%p334_p7)
}
  0x12   :  { %s365_s17 = smov 512   ;;  %s366_s18 = smov 32  }
  0x13   :  { %19 = dma.hbm_to_vmem [thread:$0]  %s415_s0, 512, %s14_s7, [#allocation5], %s365_s17, %s365_s17, %s366_s18  }
  0x14   :  { %360 = dma.done.wait [#allocation5], 2048  }
  0x15   :  { %361 = vsyncadd [#allocation5], 4294965248  ;;  %v62_v0 = vlaneseq  ;;  %vm253_vm0 = vcmask 7168   ;;  %v367_v1 = vmov 1983009808   ;;  %v368_v3 = vmov inf  }
  0x16   :  { %v60_v2 = vunpack.c.l.s4 %v367_v1  ;;  %254 = vst.msk [vmem:[#allocation2] sm:$0xff] %vm253_vm0, %v368_v3  ;;  %v23_v6 = vld [vmem:[#allocation4] sm:$0xff]  ;;  %v24_v7 = vld [vmem:[#allocation4 + $0x8] sm:$0xff]  ;;  %v25_v8 = vld [vmem:[#allocation4 + $0x10] sm:$0xff] }
  0x17   :  { %v63_v5 = vshrl.u32 %v62_v0, 7  ;;  %v26_v10 = vld [vmem:[#allocation4 + $0x18] sm:$0xff]  ;;  %v27_v11 = vld [vmem:[#allocation4 + $0x20] sm:$0xff]  ;;  %v28_v12 = vld [vmem:[#allocation4 + $0x28] sm:$0xff] }
  0x18   :  { %v61_v4 = vunpack.c.0.s8 %v60_v2  ;;  %v29_v13 = vld [vmem:[#allocation4 + $0x30] sm:$0xff]  ;;  %v30_v14 = vld [vmem:[#allocation4 + $0x38] sm:$0xff]  ;;  %v31_v15 = vld [vmem:[#allocation4 + $0x40] sm:$0xff]  ;;  %v55_v16 = vcombine.low %v23_v6, %v27_v11  ;;  %v56_v17 = vcombine.high %v23_v6, %v27_v11  ;;  %v91_v18 = vcombine.low %v24_v7, %v28_v12 }
  0x19   :  { %v92_v19 = vcombine.high %v24_v7, %v28_v12  ;;  %v32_v20 = vld [vmem:[#allocation4 + $0x48] sm:$0xff]  ;;  %v33_v21 = vld [vmem:[#allocation4 + $0x50] sm:$0xff]  ;;  %v127_v22 = vcombine.low %v25_v8, %v29_v13  ;;  %v128_v23 = vcombine.high %v25_v8, %v29_v13  ;;  %v163_v24 = vcombine.low %v26_v10, %v30_v14  ;;  %v35_v26 = vld [vmem:[#allocation4 + $0x60] sm:$0xff] }
  0x1a   :  { %v64_v9 = vsub.s32 %v61_v4, %v63_v5  ;;  %v164_v25 = vcombine.high %v26_v10, %v30_v14  ;;  %v36_v27 = vld [vmem:[#allocation4 + $0x68] sm:$0xff]  ;;  %v37_v28 = vld [vmem:[#allocation4 + $0x70] sm:$0xff]  ;;  %v34_v33 = vld [vmem:[#allocation4 + $0x58] sm:$0xff]  ;;  %v57_v35 = vcombine.low %v31_v15, %v35_v26  ;;  %v58_v36 = vcombine.high %v31_v15, %v35_v26 }
  0x1b   :  { %v38_v34 = vld [vmem:[#allocation4 + $0x78] sm:$0xff]  ;;  %v93_v37 = vcombine.low %v32_v20, %v36_v27  ;;  %v94_v38 = vcombine.high %v32_v20, %v36_v27  ;;  %v129_v39 = vcombine.low %v33_v21, %v37_v28  ;;  %v130_v40 = vcombine.high %v33_v21, %v37_v28 }
  0x1c   :  { %v65_v29 = vrot.slane %v55_v16, %v64_v9  ;;  %v72_v30 = vrot.slane %v56_v17, %v64_v9  ;;  %v101_v31 = vrot.slane %v91_v18, %v64_v9  ;;  %v108_v32 = vrot.slane %v92_v19, %v64_v9 }
  0x1d   :  { %v137_v41 = vrot.slane %v127_v22, %v64_v9  ;;  %v144_v42 = vrot.slane %v128_v23, %v64_v9  ;;  %v79_v43 = vrot.slane %v57_v35, %v64_v9  ;;  %v86_v44 = vrot.slane %v58_v36, %v64_v9 }
  0x1e   :  { %v115_v45 = vrot.slane %v93_v37, %v64_v9  ;;  %v122_v46 = vrot.slane %v94_v38, %v64_v9  ;;  %v151_v47 = vrot.slane %v129_v39, %v64_v9  ;;  %v158_v48 = vrot.slane %v130_v40, %v64_v9  ;;  %v256_v39 = vld [vmem:[#allocation2] sm:$0xff] }
  0x1f   :  { %v165_v49 = vcombine.low %v34_v33, %v38_v34  ;;  %v166_v50 = vcombine.high %v34_v33, %v38_v34  ;;  %v87_v51 = vcombine.low %v65_v29, %v79_v43  ;;  %v88_v52 = vcombine.high %v65_v29, %v79_v43 }
  0x20   :  { %v89_v53 = vcombine.low %v72_v30, %v86_v44  ;;  %v90_v54 = vcombine.high %v72_v30, %v86_v44  ;;  %v123_v55 = vcombine.low %v101_v31, %v115_v45  ;;  %v124_v56 = vcombine.high %v101_v31, %v115_v45 }
  0x21   :  { %v125_v57 = vcombine.low %v108_v32, %v122_v46  ;;  %v126_v58 = vcombine.high %v108_v32, %v122_v46  ;;  %v159_v59 = vcombine.low %v137_v41, %v151_v47  ;;  %v160_v60 = vcombine.high %v137_v41, %v151_v47 }
  0x22   :  { %v161_v61 = vcombine.low %v144_v42, %v158_v48  ;;  %v162_v62 = vcombine.high %v144_v42, %v158_v48  ;;  %v173_v63 = vrot.slane %v163_v24, %v64_v9  ;;  %v180_v0 = vrot.slane %v164_v25, %v64_v9 }
  0x23   :  { %v187_v1 = vrot.slane %v165_v49, %v64_v9  ;;  %v194_v2 = vrot.slane %v166_v50, %v64_v9  ;;  %v215_v3 = vmin.f32 %v87_v51, %v123_v55  ;;  %v216_v4 = vmin.f32 %v88_v52, %v124_v56 }
  0x24   :  { %v217_v5 = vmin.f32 %v89_v53, %v125_v57  ;;  %v218_v6 = vmin.f32 %v90_v54, %v126_v58  ;;  %v232_v16 = vmax.f32 %v87_v51, %v123_v55  ;;  %v233_v17 = vmax.f32 %v88_v52, %v124_v56 }
  0x25   :  { %v195_v7 = vcombine.low %v173_v63, %v187_v1  ;;  %v196_v8 = vcombine.high %v173_v63, %v187_v1  ;;  %v197_v10 = vcombine.low %v180_v0, %v194_v2  ;;  %v198_v11 = vcombine.high %v180_v0, %v194_v2 }
  0x26   :  { %v219_v12 = vmin.f32 %v215_v3, %v159_v59  ;;  %v220_v13 = vmin.f32 %v216_v4, %v160_v60  ;;  %v221_v14 = vmin.f32 %v217_v5, %v161_v61  ;;  %v222_v15 = vmin.f32 %v218_v6, %v162_v62 }
  0x27   :  { %v234_v18 = vmax.f32 %v89_v53, %v125_v57  ;;  %v235_v19 = vmax.f32 %v90_v54, %v126_v58  ;;  %v236_v23 = vmax.f32 %v232_v16, %v159_v59  ;;  %v237_v24 = vmax.f32 %v233_v17, %v160_v60 }
  0x28   :  { %v223_v20 = vmin.f32 %v219_v12, %v195_v7  ;;  %v224_v21 = vmin.f32 %v220_v13, %v196_v8  ;;  %v225_v22 = vmin.f32 %v221_v14, %v197_v10  ;;  %v226_v9 = vmin.f32 %v222_v15, %v198_v11 }
  0x29   :  { %v238_v25 = vmax.f32 %v234_v18, %v161_v61  ;;  %v239_v26 = vmax.f32 %v235_v19, %v162_v62  ;;  %v240_v29 = vmax.f32 %v236_v23, %v195_v7  ;;  %v241_v30 = vmax.f32 %v237_v24, %v196_v8 }
  0x2a   :  { %v227_v27 = vmin.f32 %v223_v20, %v224_v21  ;;  %v228_v28 = vmin.f32 %v225_v22, %v226_v9  ;;  %v369_v37 = vmov -inf   ;;  %v370_v38 = vmov 0  }
  0x2b   :  { %v242_v31 = vmax.f32 %v238_v25, %v197_v10  ;;  %v243_v32 = vmax.f32 %v239_v26, %v198_v11  ;;  %v244_v34 = vmax.f32 %v240_v29, %v241_v30  ;;  %255 = vst.msk [vmem:[#allocation3] sm:$0xff] %vm253_vm0, %v369_v37  ;;  %314 = vset.pattern.permute.xlu1 %v370_v38  ;;  %v371_v56 = vmov 0.0  }
  0x2c   :  { %v229_v33 = vmin.f32 %v227_v27, %v228_v28  ;;  %315 = vset.pattern.permute.xlu0 %v370_v38 }
  0x2d   :  { %v245_v35 = vmax.f32 %v242_v31, %v243_v32 }
  0x2e   :  { %230 = vmin.xlane.f32.xlu0 %v229_v33 }
  0x2f   :  { %v246_v36 = vmax.f32 %v244_v34, %v245_v35 }
  0x32   :  { %247 = vmax.xlane.f32.xlu0 %v246_v36  ;;  %v260_v42 = vld [vmem:[#allocation3] sm:$0xff] }
  0xbb   :  { %v231_v40 = vpop.xlane.xlu0 %230 }
  0xbc   :  { %v257_v41 = vmin.f32 %v256_v39, %v231_v40 }
  0xbe   :  { %259 = vst.msk [vmem:[#allocation2] sm:$0xff] %vm253_vm0, %v257_v41 }
  0xbf   :  { %v248_v43 = vpop.xlane.xlu0 %247 }
  0xc0   :  { %v261_v44 = vmax.f32 %v260_v42, %v248_v43 }
  0xc2   :  { %262 = vst.msk [vmem:[#allocation3] sm:$0xff] %vm253_vm0, %v261_v44 }
  0xc5   :  { %v271_v45 = vld [vmem:[#allocation2] sm:$0xff] }
  0xc6   :  { %v272_v46 = vmul.f32 255.0, %v271_v45 }
  0xc8   :  { %v273_v47 = vfloor.f32 %v272_v46 }
  0xc9   :  { %v266_v48 = vld [vmem:[#allocation3] sm:$0xff] }
  0xca   :  { %v267_v49 = vmul.f32 255.0, %v266_v48  ;;  %v274_v51 = vmax.f32 %v273_v47, 0.0 }
  0xcc   :  { %v268_v50 = vfloor.f32 %v267_v49  ;;  %v275_v54 = vmin.f32 %v274_v51, 255.0 }
  0xce   :  { %v269_v52 = vmax.f32 %v268_v50, 0.0 }
  0xd0   :  { %v270_v53 = vmin.f32 %v269_v52, 255.0 }
  0xd2   :  { %v276_v55 = vsub.f32 %v270_v53, %v275_v54 }
  0xd4   :  { %vm277_vm1 = vcmp.lt.f32.partialorder %v276_v55, 128.0 }
  0xd5   :  { %v303_v57 = vsel %vm277_vm1, 1.0, %v371_v56 }
  0xd6   :  { %282 = vperm.xlu1 %314, %v303_v57  }
 0x155   :  { %v283_v58 = vpop.permute.xlu1 %282 }
 0x156   :  { %285 = vst [vmem:[#allocation7] sm:$0xff] %v283_v58 }
 0x157   :  { %290 = vsyncadd [#allocation6], 96  ;;  %s372_s0 = smov [#allocation7]  }
 0x158   :  { %s291_s21 = sshll.u32 %s372_s0, 4  ;;  %s292_s21 = int_to_ptr.vmem [resolvable:$true] %s291_s21 }
 0x159   :  { %s338_s22 = scalar_lea.vmem %s292_s21, 32  ;;  %s342_s23 = scalar_lea.vmem %s292_s21, 128 }
 0x15a   :  { %p339_p8 = scmp.ne.s32.totalorder %s292_s21, %s338_s22  ;;  %p343_p9 = scmp.lt.s32.totalorder %s292_s21, %s292_s21 }
 0x15b   :  { %p344_p10 = scmp.lt.s32.totalorder %s342_s23, %s338_s22 }
 0x15d   :  { %p345_p11 = por %p344_p10, %p343_p9 }
 0x15f   :  { %p346_p12 = pnand %p345_p11, %p339_p8 }
 0x161   :  { %349 = shalt.err (!%p346_p12)
}
 0x162   :  { %s350_s26 = scalar_lea.hbm %s416_s1, 32 }
 0x163   :  { %p351_p13 = scmp.ne.s32.totalorder %s416_s1, %s350_s26  ;;  %p354_p0 = scmp.lt.u32.totalorder %s350_s26, %s416_s1 }
 0x165   :  { %p356_p1 = pnand %p354_p0, %p351_p13 }
 0x167   :  { %359 = shalt.err (!%p356_p1)
}
 0x168   :  { %s373_s2 = smov 2  }
 0x169   :  { %297 = dma.vmem_to_hbm [thread:$0]  %s292_s21, 32, %s416_s1, [#allocation6], %s366_s18, %s366_s18, %s373_s2  }
 0x16a   :  { %362 = dma.done.wait [#allocation6], 128  }
 0x16b   :  { %363 = vsyncadd [#allocation6], 4294967168 }
 0x16c   :  { %301 = vsyncpa [#allocation5], 1 }
 0x16d   :  { %302 = vsyncpa [#allocation6], 1 }

</bundles_post_ra>
